<compile_context>
chip_gen: v7x
topology: tpu7x:2x2x1
jax: 0.10.0
libtpu: 0.0.40
codegen_flags: <defaults>
</compile_context>

<pallas_src>
import functools
import math

import jax
import jax.numpy as jnp
from jax.experimental import pallas as pl
from jax.experimental.pallas import tpu as pltpu

LANES = 128
MAX_BLOCK_ROWS = 2048          # (2048, 128) f32 = 1 MiB per input per block
NCORES = 2                     # leading "parallel" axis (v7x megacore; neutral on 1-TC chips)
EPS = 1e-7                     # torch.clamp(min=1e-07, max=1-1e-07)
# clamp(sigmoid(x), eps, 1-eps) == sigmoid(clamp(x, logit(eps), logit(1-eps)))
LOGIT_CLIP = math.log((1.0 - EPS) / EPS)   # ~16.118096


def _round_up(x, m):
    return ((x + m - 1) // m) * m


def _dice_bce_kernel(pred_ref, tgt_ref,
                     bce_out, inter_out, den_out,
                     bce_acc, inter_acc, den_acc,
                     *, total, block_rows):
    s = pl.program_id(1)

    # Zero this core's single-vreg accumulators at the start of its range.
    @pl.when(s == 0)
    def _():
        bce_acc[...] = jnp.zeros_like(bce_acc)
        inter_acc[...] = jnp.zeros_like(inter_acc)
        den_acc[...] = jnp.zeros_like(den_acc)

    # Validity mask built from the UNCLAMPED linear block index: zero-pads,
    # the ragged tail of the last block, garbage rows of partial blocks and
    # duplicated overflow steps (clamped index_map) all contribute exactly 0.
    linear_blk = pl.program_id(0) * pl.num_programs(1) + s
    base = linear_blk * (block_rows * LANES)
    row = jax.lax.broadcasted_iota(jnp.int32, (block_rows, LANES), 0)
    lane = jax.lax.broadcasted_iota(jnp.int32, (block_rows, LANES), 1)
    mask = (base + row * LANES + lane) < total

    x = pred_ref[...].astype(jnp.float32)
    t = tgt_ref[...].astype(jnp.float32)

    # EUP-lean path: clamp in the logit domain and share e = exp(-|xc|).
    #   bce = softplus(xc) - t*xc  ==  -(t*log(pc) + (1-t)*log(1-pc))
    # with pc = clamp(sigmoid(x), eps, 1-eps); Dice uses p = sigmoid(xc)
    # (differs from sigmoid(x) by < eps, far below tolerance).
    xc = jnp.clip(x, -LOGIT_CLIP, LOGIT_CLIP)
    e = jnp.exp(-jnp.abs(xc))
    p = jnp.where(xc >= 0.0, 1.0, e) / (1.0 + e)
    bce = jnp.maximum(xc, 0.0) + jnp.log(1.0 + e) - t * xc

    bce = jnp.where(mask, bce, 0.0)
    pt = jnp.where(mask, p * t, 0.0)
    ps = jnp.where(mask, p + t, 0.0)

    # Partial sublane-group reduce to one (8,128) vreg before the '+=' so the
    # running accumulators stay a single vreg each (no full-block acc RMW).
    g = block_rows // 8
    bce_acc[...] += jnp.sum(bce.reshape(g, 8, LANES), axis=0)
    inter_acc[...] += jnp.sum(pt.reshape(g, 8, LANES), axis=0)
    den_acc[...] += jnp.sum(ps.reshape(g, 8, LANES), axis=0)

    # Emit this core's partials on its last step; scalar combine is wrapper-side.
    @pl.when(s == pl.num_programs(1) - 1)
    def _():
        bce_out[...] = bce_acc[...]
        inter_out[...] = inter_acc[...]
        den_out[...] = den_acc[...]


@functools.partial(jax.jit, static_argnames=("smooth",))
def dice_bce_loss(pred, target, smooth=1.0):
    """pred, target: same shape (e.g. NCHW), any float dtype. Scalar f32 loss."""
    assert pred.shape == target.shape
    total = int(pred.size)

    p_flat = pred.reshape(-1)
    t_flat = target.reshape(-1)

    # Pad only if the flat size is not lane-divisible (pad < 128 elements);
    # the in-kernel mask makes padded elements contribute exactly zero.
    rem = total % LANES
    if rem:
        p_flat = jnp.pad(p_flat, (0, LANES - rem))
        t_flat = jnp.pad(t_flat, (0, LANES - rem))
    rows = pl.cdiv(total, LANES)
    p2d = p_flat.reshape(rows, LANES)
    t2d = t_flat.reshape(rows, LANES)

    # Sublane packing multiple for the narrowest input dtype: 8 (f32),
    # 16 (bf16/f16), 32 (8-bit).
    itemsize = min(jnp.dtype(pred.dtype).itemsize, jnp.dtype(target.dtype).itemsize)
    mult = max(8, 32 // int(itemsize))

    # Split rows across NCORES; blocks as large as comfortably fits VMEM.
    block_rows = min(MAX_BLOCK_ROWS, _round_up(pl.cdiv(rows, NCORES), mult))
    block_rows = max(block_rows, mult)
    n_blocks = pl.cdiv(rows, block_rows)
    steps_per_core = pl.cdiv(n_blocks, NCORES)
    grid = (NCORES, steps_per_core)

    def in_map(c, s):
        # Clamp so overflow steps revisit the last valid block (kept in-bounds
        # for the DMA); their contribution is masked to zero inside the kernel.
        return (jnp.minimum(c * steps_per_core + s, n_blocks - 1), 0)

    out_map = lambda c, s: (c, 0, 0)
    part_shape = jax.ShapeDtypeStruct((NCORES, 8, LANES), jnp.float32)

    kernel = functools.partial(_dice_bce_kernel, total=total, block_rows=block_rows)

    bce_p, inter_p, den_p = pl.pallas_call(
        kernel,
        out_shape=(part_shape, part_shape, part_shape),
        grid_spec=pltpu.PrefetchScalarGridSpec(
            num_scalar_prefetch=0,
            grid=grid,
            in_specs=[
                pl.BlockSpec((block_rows, LANES), in_map),
                pl.BlockSpec((block_rows, LANES), in_map),
            ],
            out_specs=[
                pl.BlockSpec((None, 8, LANES), out_map),
                pl.BlockSpec((None, 8, LANES), out_map),
                pl.BlockSpec((None, 8, LANES), out_map),
            ],
            scratch_shapes=[
                pltpu.VMEM((8, LANES), jnp.float32),   # running sum of BCE terms
                pltpu.VMEM((8, LANES), jnp.float32),   # running sum of p * t
                pltpu.VMEM((8, LANES), jnp.float32),   # running sum of p + t
            ],
        ),
        compiler_params=pltpu.CompilerParams(
            dimension_semantics=("parallel", "arbitrary"),
            vmem_limit_bytes=32 * 1024 * 1024,
        ),
    )(p2d, t2d)

    # Tiny wrapper-side combine of the per-core (8,128) partials.
    bce_mean = jnp.sum(bce_p) / jnp.float32(total)          # BCELoss mean reduction
    inter = jnp.sum(inter_p)
    denom = jnp.sum(den_p)
    dice = (2.0 * inter + jnp.float32(smooth)) / (denom + jnp.float32(smooth))
    return (1.0 - dice) + bce_mean                           # diceloss + bceloss


def _reference(pred, target, smooth=1.0):
    # Pure-JAX mirror of the PyTorch module, for a sanity check.
    p = jax.nn.sigmoid(pred.astype(jnp.float32))
    t = target.astype(jnp.float32)
    pc = jnp.clip(p, EPS, 1.0 - EPS)
    bce = -jnp.mean(t * jnp.log(pc) + (1.0 - t) * jnp.log(1.0 - pc))
    pf = p.reshape(-1)
    tf = t.reshape(-1)
    inter = jnp.sum(pf * tf)
    dice = (2.0 * inter + smooth) / (jnp.sum(pf) + jnp.sum(tf) + smooth)
    return (1.0 - dice) + bce


if __name__ == "__main__":
    key = jax.random.PRNGKey(0)
    k1, k2, k3, k4, k5, k6 = jax.random.split(key, 6)

    # Primary small NCHW test (divisible -> no pad, two single-block cores).
    pred = jax.random.normal(k1, (2, 4, 16, 16), dtype=jnp.float32)
    target = (jax.random.uniform(k2, (2, 4, 16, 16)) > 0.5).astype(jnp.float32)
    loss = dice_bce_loss(pred, target)
    jax.block_until_ready(loss)
    ref = _reference(pred, target)
    assert jnp.allclose(loss, ref, rtol=1e-4, atol=1e-4), (loss, ref)

    # Non-divisible shape -> exercises the small pad + in-kernel masking.
    pred_b = jax.random.normal(k3, (2, 3, 13, 13), dtype=jnp.float32)
    target_b = (jax.random.uniform(k4, (2, 3, 13, 13)) > 0.5).astype(jnp.float32)
    loss_b = dice_bce_loss(pred_b, target_b)
    jax.block_until_ready(loss_b)
    ref_b = _reference(pred_b, target_b)
    assert jnp.allclose(loss_b, ref_b, rtol=1e-4, atol=1e-4), (loss_b, ref_b)

    # Larger shape -> multi-block grid split across the parallel axis.
    pred_c = jax.random.normal(k5, (2, 4, 128, 256), dtype=jnp.float32)
    target_c = (jax.random.uniform(k6, (2, 4, 128, 256)) > 0.5).astype(jnp.float32)
    loss_c = dice_bce_loss(pred_c, target_c)
    jax.block_until_ready(loss_c)
    ref_c = _reference(pred_c, target_c)
    assert jnp.allclose(loss_c, ref_c, rtol=1e-4, atol=1e-4), (loss_c, ref_c)

    # bf16 logits path (native low-precision inputs, 16-row packing multiple).
    pred_d = pred.astype(jnp.bfloat16)
    loss_d = dice_bce_loss(pred_d, target)
    jax.block_until_ready(loss_d)
    ref_d = _reference(pred_d, target)
    assert jnp.allclose(loss_d, ref_d, rtol=1e-4, atol=1e-4), (loss_d, ref_d)

    print("KERNEL_OK")
</pallas_src>

<mosaic_0001>
module attributes {stable_mosaic.version = 11 : i64} {
  func.func @_dice_bce_kernel(%arg0: i32, %arg1: i32, %arg2: memref<8x128xf32, #tpu.memory_space<vmem>>, %arg3: memref<8x128xf32, #tpu.memory_space<vmem>>, %arg4: memref<1x8x128xf32, #tpu.memory_space<vmem>>, %arg5: memref<1x8x128xf32, #tpu.memory_space<vmem>>, %arg6: memref<1x8x128xf32, #tpu.memory_space<vmem>>, %arg7: memref<8x128xf32, #tpu.memory_space<vmem>>, %arg8: memref<8x128xf32, #tpu.memory_space<vmem>>, %arg9: memref<8x128xf32, #tpu.memory_space<vmem>>) attributes {dimension_semantics = [#tpu.dimension_semantics<parallel>, #tpu.dimension_semantics<arbitrary>], iteration_bounds = array<i64: 2, 1>, scalar_prefetch = 0 : i64, scratch_operands = 3 : i64, tpu.core_type = #tpu.core_type<tc>, window_params = [{transform_indices = @transform_0, window_bounds = array<i64: 8, 128>}, {transform_indices = @transform_1, window_bounds = array<i64: 8, 128>}, {transform_indices = @transform_2, window_bounds = array<i64: 1, 8, 128>}, {transform_indices = @transform_3, window_bounds = array<i64: 1, 8, 128>}, {transform_indices = @transform_4, window_bounds = array<i64: 1, 8, 128>}]} {
    %c0_i32 = arith.constant 0 : i32
    %0 = arith.cmpi eq, %arg1, %c0_i32 : i32
    %1 = arith.extui %0 : i1 to i32
    %c0_i32_0 = arith.constant 0 : i32
    %2 = arith.cmpi ne, %1, %c0_i32_0 : i32
    scf.if %2 {
      %cst_31 = arith.constant 0.000000e+00 : f32
      %66 = vector.broadcast %cst_31 : f32 to vector<8x128xf32>
      %c0_32 = arith.constant 0 : index
      %c0_33 = arith.constant 0 : index
      %67 = vector.load %arg7[%c0_32, %c0_33] : memref<8x128xf32, #tpu.memory_space<vmem>>, vector<8x128xf32>
      tpu.vector_store %arg7[%c0_32, %c0_33], %66 {strides = array<i32>} : memref<8x128xf32, #tpu.memory_space<vmem>>, vector<8x128xf32>,
      %cst_34 = arith.constant 0.000000e+00 : f32
      %68 = vector.broadcast %cst_34 : f32 to vector<8x128xf32>
      %c0_35 = arith.constant 0 : index
      %c0_36 = arith.constant 0 : index
      %69 = vector.load %arg8[%c0_35, %c0_36] : memref<8x128xf32, #tpu.memory_space<vmem>>, vector<8x128xf32>
      tpu.vector_store %arg8[%c0_35, %c0_36], %68 {strides = array<i32>} : memref<8x128xf32, #tpu.memory_space<vmem>>, vector<8x128xf32>,
      %cst_37 = arith.constant 0.000000e+00 : f32
      %70 = vector.broadcast %cst_37 : f32 to vector<8x128xf32>
      %c0_38 = arith.constant 0 : index
      %c0_39 = arith.constant 0 : index
      %71 = vector.load %arg9[%c0_38, %c0_39] : memref<8x128xf32, #tpu.memory_space<vmem>>, vector<8x128xf32>
      tpu.vector_store %arg9[%c0_38, %c0_39], %70 {strides = array<i32>} : memref<8x128xf32, #tpu.memory_space<vmem>>, vector<8x128xf32>,
    } else {
    }
    %c1_i32 = arith.constant 1 : i32
    %3 = arith.muli %arg0, %c1_i32 : i32
    %4 = arith.addi %3, %arg1 : i32
    %c1024_i32 = arith.constant 1024 : i32
    %5 = arith.muli %4, %c1024_i32 : i32
    %6 = tpu.iota {dimensions = array<i32: 0>} : vector<8x128xi32>
    %7 = tpu.iota {dimensions = array<i32: 1>} : vector<8x128xi32>
    %c128_i32 = arith.constant 128 : i32
    %8 = vector.broadcast %c128_i32 : i32 to vector<8x128xi32>
    %9 = arith.muli %6, %8 : vector<8x128xi32>
    %10 = vector.broadcast %5 : i32 to vector<8x128xi32>
    %11 = arith.addi %10, %9 : vector<8x128xi32>
    %12 = arith.addi %11, %7 : vector<8x128xi32>
    %c2048_i32 = arith.constant 2048 : i32
    %13 = vector.broadcast %c2048_i32 : i32 to vector<8x128xi32>
    %14 = arith.cmpi slt, %12, %13 : vector<8x128xi32>
    %c0 = arith.constant 0 : index
    %c0_1 = arith.constant 0 : index
    %15 = vector.load %arg2[%c0, %c0_1] : memref<8x128xf32, #tpu.memory_space<vmem>>, vector<8x128xf32>
    %c0_2 = arith.constant 0 : index
    %c0_3 = arith.constant 0 : index
    %16 = vector.load %arg3[%c0_2, %c0_3] : memref<8x128xf32, #tpu.memory_space<vmem>>, vector<8x128xf32>
    %cst = arith.constant -16.1180954 : f32
    %cst_4 = arith.constant 16.1180954 : f32
    %17 = vector.broadcast %cst : f32 to vector<8x128xf32>
    %18 = arith.maximumf %17, %15 : vector<8x128xf32>
    %19 = vector.broadcast %cst_4 : f32 to vector<8x128xf32>
    %20 = arith.minimumf %19, %18 : vector<8x128xf32>
    %21 = math.absf %20 : vector<8x128xf32>
    %cst_5 = arith.constant 0.000000e+00 : f32
    %22 = vector.broadcast %cst_5 : f32 to vector<8x128xf32>
    %23 = arith.subf %22, %21 : vector<8x128xf32>
    %24 = math.exp %23 : vector<8x128xf32>
    %cst_6 = arith.constant 0.000000e+00 : f32
    %25 = vector.broadcast %cst_6 : f32 to vector<8x128xf32>
    %26 = arith.cmpf oge, %20, %25 : vector<8x128xf32>
    %cst_7 = arith.constant 1.000000e+00 : f32
    %27 = vector.broadcast %cst_7 : f32 to vector<8x128xf32>
    %28 = arith.select %26, %27, %24 : vector<8x128xi1>, vector<8x128xf32>
    %cst_8 = arith.constant 1.000000e+00 : f32
    %29 = vector.broadcast %cst_8 : f32 to vector<8x128xf32>
    %30 = arith.addf %29, %24 : vector<8x128xf32>
    %31 = arith.divf %28, %30 : vector<8x128xf32>
    %cst_9 = arith.constant 0.000000e+00 : f32
    %32 = vector.broadcast %cst_9 : f32 to vector<8x128xf32>
    %33 = arith.maximumf %20, %32 : vector<8x128xf32>
    %cst_10 = arith.constant 1.000000e+00 : f32
    %34 = vector.broadcast %cst_10 : f32 to vector<8x128xf32>
    %35 = arith.addf %34, %24 : vector<8x128xf32>
    %36 = math.log %35 : vector<8x128xf32>
    %37 = arith.addf %33, %36 : vector<8x128xf32>
    %38 = arith.mulf %16, %20 : vector<8x128xf32>
    %39 = arith.subf %37, %38 : vector<8x128xf32>
    %cst_11 = arith.constant 0.000000e+00 : f32
    %40 = vector.broadcast %cst_11 : f32 to vector<8x128xf32>
    %41 = arith.select %14, %39, %40 : vector<8x128xi1>, vector<8x128xf32>
    %42 = arith.mulf %31, %16 : vector<8x128xf32>
    %cst_12 = arith.constant 0.000000e+00 : f32
    %43 = vector.broadcast %cst_12 : f32 to vector<8x128xf32>
    %44 = arith.select %14, %42, %43 : vector<8x128xi1>, vector<8x128xf32>
    %45 = arith.addf %31, %16 : vector<8x128xf32>
    %cst_13 = arith.constant 0.000000e+00 : f32
    %46 = vector.broadcast %cst_13 : f32 to vector<8x128xf32>
    %47 = arith.select %14, %45, %46 : vector<8x128xi1>, vector<8x128xf32>
    %c0_14 = arith.constant 0 : index
    %c0_15 = arith.constant 0 : index
    %48 = vector.load %arg7[%c0_14, %c0_15] : memref<8x128xf32, #tpu.memory_space<vmem>>, vector<8x128xf32>
    %49 = vector.shape_cast %41 : vector<8x128xf32> to vector<1x8x128xf32>
    %cst_16 = arith.constant dense<0.000000e+00> : vector<8x128xf32>
    %50 = vector.multi_reduction <add>, %49, %cst_16 [0] : vector<1x8x128xf32> to vector<8x128xf32>
    %51 = arith.addf %48, %50 : vector<8x128xf32>
    %c0_17 = arith.constant 0 : index
    %c0_18 = arith.constant 0 : index
    %52 = vector.load %arg7[%c0_17, %c0_18] : memref<8x128xf32, #tpu.memory_space<vmem>>, vector<8x128xf32>
    tpu.vector_store %arg7[%c0_17, %c0_18], %51 {strides = array<i32>} : memref<8x128xf32, #tpu.memory_space<vmem>>, vector<8x128xf32>,
    %c0_19 = arith.constant 0 : index
    %c0_20 = arith.constant 0 : index
    %53 = vector.load %arg8[%c0_19, %c0_20] : memref<8x128xf32, #tpu.memory_space<vmem>>, vector<8x128xf32>
    %54 = vector.shape_cast %44 : vector<8x128xf32> to vector<1x8x128xf32>
    %cst_21 = arith.constant dense<0.000000e+00> : vector<8x128xf32>
    %55 = vector.multi_reduction <add>, %54, %cst_21 [0] : vector<1x8x128xf32> to vector<8x128xf32>
    %56 = arith.addf %53, %55 : vector<8x128xf32>
    %c0_22 = arith.constant 0 : index
    %c0_23 = arith.constant 0 : index
    %57 = vector.load %arg8[%c0_22, %c0_23] : memref<8x128xf32, #tpu.memory_space<vmem>>, vector<8x128xf32>
    tpu.vector_store %arg8[%c0_22, %c0_23], %56 {strides = array<i32>} : memref<8x128xf32, #tpu.memory_space<vmem>>, vector<8x128xf32>,
    %c0_24 = arith.constant 0 : index
    %c0_25 = arith.constant 0 : index
    %58 = vector.load %arg9[%c0_24, %c0_25] : memref<8x128xf32, #tpu.memory_space<vmem>>, vector<8x128xf32>
    %59 = vector.shape_cast %47 : vector<8x128xf32> to vector<1x8x128xf32>
    %cst_26 = arith.constant dense<0.000000e+00> : vector<8x128xf32>
    %60 = vector.multi_reduction <add>, %59, %cst_26 [0] : vector<1x8x128xf32> to vector<8x128xf32>
    %61 = arith.addf %58, %60 : vector<8x128xf32>
    %c0_27 = arith.constant 0 : index
    %c0_28 = arith.constant 0 : index
    %62 = vector.load %arg9[%c0_27, %c0_28] : memref<8x128xf32, #tpu.memory_space<vmem>>, vector<8x128xf32>
    tpu.vector_store %arg9[%c0_27, %c0_28], %61 {strides = array<i32>} : memref<8x128xf32, #tpu.memory_space<vmem>>, vector<8x128xf32>,
    %c0_i32_29 = arith.constant 0 : i32
    %63 = arith.cmpi eq, %arg1, %c0_i32_29 : i32
    %64 = arith.extui %63 : i1 to i32
    %c0_i32_30 = arith.constant 0 : i32
    %65 = arith.cmpi ne, %64, %c0_i32_30 : i32
    scf.if %65 {
      %c0_31 = arith.constant 0 : index
      %c0_32 = arith.constant 0 : index
      %66 = vector.load %arg7[%c0_31, %c0_32] : memref<8x128xf32, #tpu.memory_space<vmem>>, vector<8x128xf32>
      %c0_33 = arith.constant 0 : index
      %c0_34 = arith.constant 0 : index
      %c0_35 = arith.constant 0 : index
      %67 = vector.load %arg4[%c0_33, %c0_34, %c0_35] : memref<1x8x128xf32, #tpu.memory_space<vmem>>, vector<1x8x128xf32>
      %68 = vector.shape_cast %67 : vector<1x8x128xf32> to vector<8x128xf32>
      %69 = vector.shape_cast %66 : vector<8x128xf32> to vector<1x8x128xf32>
      tpu.vector_store %arg4[%c0_33, %c0_34, %c0_35], %69 {strides = array<i32>} : memref<1x8x128xf32, #tpu.memory_space<vmem>>, vector<1x8x128xf32>,
      %c0_36 = arith.constant 0 : index
      %c0_37 = arith.constant 0 : index
      %70 = vector.load %arg8[%c0_36, %c0_37] : memref<8x128xf32, #tpu.memory_space<vmem>>, vector<8x128xf32>
      %c0_38 = arith.constant 0 : index
      %c0_39 = arith.constant 0 : index
      %c0_40 = arith.constant 0 : index
      %71 = vector.load %arg5[%c0_38, %c0_39, %c0_40] : memref<1x8x128xf32, #tpu.memory_space<vmem>>, vector<1x8x128xf32>
      %72 = vector.shape_cast %71 : vector<1x8x128xf32> to vector<8x128xf32>
      %73 = vector.shape_cast %70 : vector<8x128xf32> to vector<1x8x128xf32>
      tpu.vector_store %arg5[%c0_38, %c0_39, %c0_40], %73 {strides = array<i32>} : memref<1x8x128xf32, #tpu.memory_space<vmem>>, vector<1x8x128xf32>,
      %c0_41 = arith.constant 0 : index
      %c0_42 = arith.constant 0 : index
      %74 = vector.load %arg9[%c0_41, %c0_42] : memref<8x128xf32, #tpu.memory_space<vmem>>, vector<8x128xf32>
      %c0_43 = arith.constant 0 : index
      %c0_44 = arith.constant 0 : index
      %c0_45 = arith.constant 0 : index
      %75 = vector.load %arg6[%c0_43, %c0_44, %c0_45] : memref<1x8x128xf32, #tpu.memory_space<vmem>>, vector<1x8x128xf32>
      %76 = vector.shape_cast %75 : vector<1x8x128xf32> to vector<8x128xf32>
      %77 = vector.shape_cast %74 : vector<8x128xf32> to vector<1x8x128xf32>
      tpu.vector_store %arg6[%c0_43, %c0_44, %c0_45], %77 {strides = array<i32>} : memref<1x8x128xf32, #tpu.memory_space<vmem>>, vector<1x8x128xf32>,
    } else {
    }
    return
  }
  func.func @transform_0(%arg0: i32, %arg1: i32) -> (i32, i32) {
    %c1_i32 = arith.constant 1 : i32
    %0 = arith.muli %arg0, %c1_i32 : i32
    %1 = arith.addi %0, %arg1 : i32
    %c1_i32_0 = arith.constant 1 : i32
    %2 = arith.minsi %1, %c1_i32_0 : i32
    %c0_i32 = arith.constant 0 : i32
    %c0_i32_1 = arith.constant 0 : i32
    return %2, %c0_i32 : i32, i32
  }
  func.func @transform_1(%arg0: i32, %arg1: i32) -> (i32, i32) {
    %c1_i32 = arith.constant 1 : i32
    %0 = arith.muli %arg0, %c1_i32 : i32
    %1 = arith.addi %0, %arg1 : i32
    %c1_i32_0 = arith.constant 1 : i32
    %2 = arith.minsi %1, %c1_i32_0 : i32
    %c0_i32 = arith.constant 0 : i32
    %c0_i32_1 = arith.constant 0 : i32
    return %2, %c0_i32 : i32, i32
  }
  func.func @transform_2(%arg0: i32, %arg1: i32) -> (i32, i32, i32) {
    %c0_i32 = arith.constant 0 : i32
    %c0_i32_0 = arith.constant 0 : i32
    %c0_i32_1 = arith.constant 0 : i32
    return %arg0, %c0_i32, %c0_i32_0 : i32, i32, i32
  }
  func.func @transform_3(%arg0: i32, %arg1: i32) -> (i32, i32, i32) {
    %c0_i32 = arith.constant 0 : i32
    %c0_i32_0 = arith.constant 0 : i32
    %c0_i32_1 = arith.constant 0 : i32
    return %arg0, %c0_i32, %c0_i32_0 : i32, i32, i32
  }
  func.func @transform_4(%arg0: i32, %arg1: i32) -> (i32, i32, i32) {
    %c0_i32 = arith.constant 0 : i32
    %c0_i32_0 = arith.constant 0 : i32
    %c0_i32_1 = arith.constant 0 : i32
    return %arg0, %c0_i32, %c0_i32_0 : i32, i32, i32
  }
}

</mosaic_0001>

<bundles_post_ra>
// kernel: dice_bce_loss.1
= control target key start
LH: loop header
LB: loop body
LE: loop exit
PB: predicated region body
PF: predicated region fallthrough
CT: control target
= control target key end

     0   :  { %s582_s15 = smov 0   ;;  %s584_s16 = smov 0   ;;  %s624_s0 = inlined_call_operand.vmem [shape: f32[16,128], index: 0, kind: input, shape index: {}]   ;;  %s625_s1 = inlined_call_operand.vmem [shape: f32[16,128], index: 1, kind: input, shape index: {}]   ;;  %s626_s2 = inlined_call_operand.vmem [shape: f32[2,8,128], index: 2, kind: output, shape index: {0}]   ;;  %s627_s3 = inlined_call_operand.vmem [shape: f32[2,8,128], index: 3, kind: output, shape index: {1}]   ;;  %s628_s4 = inlined_call_operand.vmem [shape: f32[2,8,128], index: 4, kind: output, shape index: {2}]  }
   0x1   :  { %s586_s17 = smov 0  }
   0x2 LB: > { %s27_s18 = sadd.s32 1, %s551_s16  ;;  %p487_p0 = scmp.ge.s32.totalorder %s555_s17, 1  ;;  %s555_s17 = sphi %s586_s17, %s15_s17   ;;  %s551_s16 = sphi %s584_s16, %s630_s16   ;;  %s547_s15 = sphi %s582_s15, %s629_s15  }
   0x3   : > { %p29_p1 = scmp.ge.s32.totalorder %s27_s18, 2  ;;  %p211_p2 = scmp.lt.s32.totalorder %s555_s17, 3 }
   0x5   : > { %s632_s18 = smov (%p29_p1, %s27_s18), 0  ;;  %p212_p3 = pnand %p487_p0, %p211_p2 }
   0x6   : > { %p254_p4 = scmp.lt.s32.totalorder (!%p212_p3), %s547_s15, 1  ;;  %v294_v5 = vlaneseq (!%p212_p3)  ;;  %s499_s25 = sshll.u32 (!%p212_p3), %s547_s15, 10 }
   0x7   : > { %215 = sbr.rel (%p212_p3) target bundleno = 62 (0x3e), region = 28  ;;  %v299_v10 = vstv (!%p212_p3), %s499_s25 }
   0x8   : > { %v295_v6 = vshrl.u32 (!%p212_p3), %v294_v5, 7  ;;  %v297_v11 = vand.u32 (!%p212_p3), 127, %v294_v5 }
   0xa   : > { %v298_v9 = vmul.u32 (!%p212_p3), 128, %v295_v6 }
   0xc   : > { %v300_v12 = vadd.s32 (!%p212_p3), %v299_v10, %v298_v9 }
   0xe   : > { %s255_s19 = scalar_select %p254_p4, %s547_s15, 1  ;;  %v301_v13 = vadd.s32 %v300_v12, %v297_v11 }
  0x10   : > { %s257_s20 = scalar_select %p254_p4, %s255_s19, 1  ;;  %vm302_vm1 = vcmp.lt.s32.totalorder %v301_v13, 2048 }
  0x11   : > { %s496_s29 = sshll.u32 %s255_s19, 3 }
  0x12   : > { %s491_s21 = sshll.u32 %s257_s20, 3  ;;  %s280_s6 = scalar_lea.vmem %s627_s3, %s496_s29 }
  0x13   : > { %s259_s24 = scalar_lea.vmem %s624_s0, %s491_s21  ;;  %s269_s28 = scalar_lea.vmem %s625_s1, %s491_s21 }
  0x14   : > { %v303_v0 = vld [vmem:[%s259_s24] sm:$0xff]  ;;  %s284_s9 = scalar_lea.vmem %s628_s4, %s496_s29  ;;  %s276_s12 = scalar_lea.vmem %s626_s2, %s496_s29 }
  0x15   : > { %v500_v1 = vclamps-f32 %v303_v0, 16.118095  ;;  %v304_v15 = vld [vmem:[%s269_s28] sm:$0xff] }
  0x17   : > { %v307_v2 = vand.u32 2147483647, %v500_v1  ;;  %vm311_vm0 = vcmp.ge.f32.partialorder %v500_v1, 0.0  ;;  %v316_v17 = vmax.f32 %v500_v1, 0.0  ;;  %v320_v21 = vmul.f32 %v500_v1, %v304_v15 }
  0x19   : > { %v308_v3 = vsub.f32 0.0, %v307_v2 }
  0x1b   : > { %v309_v4 = vmul.f32 1.442695, %v308_v3 }
  0x1d   : > { %527 = vpow2.f32 %v309_v4 }
  0x27   : > { %v528_v7 = vpop.eup %527 }
  0x28   : > { %v313_v8 = vadd.f32 1.0, %v528_v7  ;;  %v312_v14 = vsel %vm311_vm0, 1.0, %v528_v7 }
  0x2a   : > { %529 = vrcp.f32 %v313_v8 }
  0x2b   : > { %531 = vlog2.f32 %v313_v8 }
  0x34   : > { %v530_v16 = vpop.eup %529 }
  0x35   : > { %v532_v18 = vpop.eup %531  ;;  %v315_v19 = vmul.f32 %v530_v16, %v312_v14 }
  0x36   : > { %v318_v20 = vmul.f32 0.6931472, %v532_v18 }
  0x37   : > { %v323_v22 = vmul.f32 %v315_v19, %v304_v15  ;;  %v325_v23 = vadd.f32 %v315_v19, %v304_v15 }
  0x38   : > { %v319_v24 = vadd.f32 %v318_v20, %v316_v17 }
  0x39   : > { %v324_v25 = vsel %vm302_vm1, %v323_v22, 0.0  ;;  %v326_v26 = vsel %vm302_vm1, %v325_v23, 0.0 }
  0x3a   : > { %v321_v27 = vsub.f32 %v319_v24, %v320_v21  ;;  %345 = vst [vmem:[%s280_s6] sm:$0xff] %v324_v25  ;;  %347 = vst [vmem:[%s284_s9] sm:$0xff] %v326_v26 }
  0x3c   : > { %v322_v28 = vsel %vm302_vm1, %v321_v27, 0.0 }
  0x3d   : > { %343 = vst [vmem:[%s276_s12] sm:$0xff] %v322_v28 }
  0x3e PF: > { %s15_s17 = sadd.s32 1, %s555_s17   ;;  %s629_s15 = smov %s551_s16 }
  0x3f   : > { %p12_p5 = scmp.ge.s32.totalorder %s15_s17, 4   ;;  %s630_s16 = smov %s632_s18 }
  0x41   :  { %14 = sbr.rel (!%p12_p5) target bundleno = 2 (0x2), region = 93 }

</bundles_post_ra>
